<compile_context>
chip_gen: v7x
topology: tpu7x:2x2x1
jax: 0.10.0
libtpu: 0.0.40
codegen_flags: <defaults>
</compile_context>

<pallas_src>
import jax
import jax.numpy as jnp
from jax.experimental import pallas as pl
from jax.experimental.pallas import tpu as pltpu

LANE = 128         # vreg lane width; every hidden/output width is zero-padded to this
SUBLANE = 8        # f32 sublane count
ROW_ALIGN = 16     # bf16 packs 2 rows per sublane -> keep slab row offsets 16-aligned
MAX_B_TILE = 1024  # per-step batch tile cap (per-step VMEM << limits on v5e/v6e/v7x)
NEG_SLOPE = 0.2


def _round_up(x, m):
    return (x + m - 1) // m * m


def _pack_params(params, compute_dtype):
    """Pack the 5 (W, b) pairs into one contiguous, zero-padded (rows, 128) slab.

    Layout (static, ROW_ALIGN-aligned row offsets):
      rows [0, r0)            : W1 (in_features x width1), zero padded to (r0, 128)
      rows [r0, r0 + 128)     : W2 zero padded to (128, 128)
      ...                     : W3, W4, W5 (128, 128) blocks
      last ROW_ALIGN rows     : bias block; row j = bias of layer j (zero padded)

    Zero padding is numerically exact: padded activation lanes are exactly 0 and the
    padded weight rows only ever multiply those zero lanes.
    """
    in_features = params[0][0].shape[0]
    n_layers = len(params)
    reserved = [_round_up(max(in_features, 1), ROW_ALIGN)] + [LANE] * (n_layers - 1)
    offsets = [0]
    for r in reserved[:-1]:
        offsets.append(offsets[-1] + r)
    bias_off = offsets[-1] + reserved[-1]
    bias_rows = ROW_ALIGN
    slab_rows = bias_off + bias_rows

    blocks = []
    for i, (w, _) in enumerate(params):
        blk = jnp.zeros((reserved[i], LANE), compute_dtype)
        blk = blk.at[: w.shape[0], : w.shape[1]].set(w.astype(compute_dtype))
        blocks.append(blk)
    bias_blk = jnp.zeros((bias_rows, LANE), compute_dtype)
    for i, (_, b) in enumerate(params):
        bv = jnp.reshape(b, (-1,)).astype(compute_dtype)
        bias_blk = bias_blk.at[i, : bv.shape[0]].set(bv)
    blocks.append(bias_blk)
    slab = jnp.concatenate(blocks, axis=0)

    # Rows actually consumed by each matmul: layer 0 uses the true in_features rows,
    # layers 1.. use the full 128 (their inputs are 128-lane padded activations).
    slice_rows = (in_features,) + (LANE,) * (n_layers - 1)
    meta = dict(w_offsets=tuple(offsets), w_slice_rows=slice_rows,
                bias_off=bias_off, bias_rows=bias_rows, slab_rows=slab_rows)
    return slab, meta


def _make_kernel(meta, n_layers, out_dim, compute_dtype):
    w_offsets = meta["w_offsets"]
    w_rows = meta["w_slice_rows"]
    bias_off = meta["bias_off"]
    bias_rows = meta["bias_rows"]

    def kernel(x_ref, p_ref, out_ref):
        # One small tile holding all biases (row j = bias of layer j); add in f32.
        biases = p_ref[bias_off:bias_off + bias_rows, :].astype(jnp.float32)
        h = x_ref[...].astype(compute_dtype)                  # MXU operand dtype
        acc = None
        for j in range(n_layers):
            w = p_ref[w_offsets[j]:w_offsets[j] + w_rows[j], :]
            # f32 accumulation on the MXU.  (For bit-exact f32 parity with a CPU f32
            # reference one would additionally pass precision=jax.lax.Precision.HIGHEST;
            # default precision already matches to ~1e-5 at these sizes.)
            acc = jnp.dot(h, w, preferred_element_type=jnp.float32)
            acc = acc + biases[j:j + 1, :]                    # bias add in f32
            if j < n_layers - 1:
                acc = jnp.maximum(acc, NEG_SLOPE * acc)       # LeakyReLU(0.2): mul + max
                h = acc.astype(compute_dtype)
        # Store only the real output columns (masked vst): no 128-wide output slab and
        # no wrapper-side slice / extra HBM pass afterwards.
        out_ref[...] = acc[:, :out_dim].astype(out_ref.dtype)

    return kernel


def make_encoder1(params, compute_dtype=jnp.bfloat16):
    """Build a jitted forward(x) implementing Encoder1 with the given parameters.

    params: list of (W (in, out), b (out,) or (1, out)) for the 5 Linear layers.
    compute_dtype: MXU operand dtype (bf16 = fast path, f32 = parity path).
    """
    in_features = params[0][0].shape[0]
    out_dim = params[-1][0].shape[1]
    n_layers = len(params)
    widths = [w.shape[1] for (w, _) in params]
    if max(widths) > LANE:
        raise ValueError("this kernel assumes every layer output width <= 128")

    slab, meta = _pack_params(params, compute_dtype)
    slab_rows = meta["slab_rows"]
    kernel = _make_kernel(meta, n_layers, out_dim, compute_dtype)

    @jax.jit
    def forward(x):
        batch = x.shape[0]
        assert x.shape[1] == in_features
        # Batch tiling:
        #  * no wrapper-side padding of x; the last grid block may be ragged,
        #  * >= 2 grid steps whenever batch > 8 so the "parallel" axis can be split
        #    across both v7x TensorCores,
        #  * tile capped at 1024 rows (per-step VMEM well under budget everywhere).
        if batch <= SUBLANE:
            b_tile = batch
        else:
            b_tile = min(MAX_B_TILE, _round_up(pl.cdiv(batch, 2), SUBLANE))
        grid = (pl.cdiv(batch, b_tile),)

        return pl.pallas_call(
            kernel,
            out_shape=jax.ShapeDtypeStruct((batch, out_dim), jnp.float32),
            grid=grid,
            in_specs=[
                # Activations: tiled along batch; feature dim at full extent (no K pad).
                pl.BlockSpec((b_tile, in_features), lambda i: (i, 0)),
                # Weight slab: constant block index -> stays VMEM-resident across steps.
                pl.BlockSpec((slab_rows, LANE), lambda i: (0, 0)),
            ],
            out_specs=pl.BlockSpec((b_tile, out_dim), lambda i: (i, 0)),
            compiler_params=pltpu.CompilerParams(
                dimension_semantics=("parallel",)),
        )(x, slab)

    return forward


if __name__ == "__main__":
    # args-equivalent hyperparameters (small, synthetic).
    IN_FEATURES = 16        # inferred by LazyLinear at the first forward
    DX = 32                 # args['dx']
    DIM_FEATURES_X = 8      # args['DIM_FEATURES_x']
    BATCH = 8

    key = jax.random.PRNGKey(0)
    k_x, k1, k2, k3, k4, k5, k_x2 = jax.random.split(key, 7)

    def init_linear(k, fan_in, fan_out):
        """Mimics torch.nn.Linear default init (uniform +/- 1/sqrt(fan_in))."""
        kw, kb = jax.random.split(k)
        bound = 1.0 / (fan_in ** 0.5)
        w = jax.random.uniform(kw, (fan_in, fan_out), jnp.float32, -bound, bound)
        b = jax.random.uniform(kb, (fan_out,), jnp.float32, -bound, bound)
        return w, b

    def reference_forward(x, params):
        h = x
        for i, (w, b) in enumerate(params):
            h = h @ w + jnp.reshape(b, (1, -1))
            if i < len(params) - 1:
                h = jnp.where(h >= 0, h, 0.2 * h)
        return h

    params = [
        init_linear(k1, IN_FEATURES, DX),
        init_linear(k2, DX, 15),
        init_linear(k3, 15, 15),
        init_linear(k4, 15, 15),
        init_linear(k5, 15, DIM_FEATURES_X),
    ]

    x = jax.random.normal(k_x, (BATCH, IN_FEATURES), jnp.float32)

    # Fast path: bf16 MXU operands, f32 accumulation / elementwise.
    fwd_bf16 = make_encoder1(params, compute_dtype=jnp.bfloat16)
    out_fast = jax.block_until_ready(fwd_bf16(x))

    # Parity path: f32 operands (matches the PyTorch f32 module numerics).
    fwd_f32 = make_encoder1(params, compute_dtype=jnp.float32)
    out_exact = jax.block_until_ready(fwd_f32(x))

    ref = reference_forward(x, params)
    assert out_fast.shape == (BATCH, DIM_FEATURES_X)
    assert out_exact.shape == (BATCH, DIM_FEATURES_X)
    assert jnp.allclose(out_exact, ref, atol=1e-5, rtol=1e-5)
    assert jnp.allclose(out_fast, ref, atol=5e-2, rtol=5e-2)

    # Multi-step grid + ragged last batch block (no wrapper-side pad of x, no out slice).
    x2 = jax.random.normal(k_x2, (20, IN_FEATURES), jnp.float32)
    out2 = jax.block_until_ready(fwd_bf16(x2))
    ref2 = reference_forward(x2, params)
    assert out2.shape == (20, DIM_FEATURES_X)
    assert jnp.allclose(out2, ref2, atol=5e-2, rtol=5e-2)

    print("KERNEL_OK")
</pallas_src>

<mosaic_0001>
module attributes {stable_mosaic.version = 11 : i64} {
  func.func @kernel(%arg0: i32, %arg1: memref<8x16xf32, #tpu.memory_space<vmem>>, %arg2: memref<544x128xbf16, #tpu.memory_space<vmem>>, %arg3: memref<8x8xf32, #tpu.memory_space<vmem>>) attributes {dimension_semantics = [#tpu.dimension_semantics<parallel>], iteration_bounds = array<i64: 1>, scalar_prefetch = 0 : i64, scratch_operands = 0 : i64, tpu.core_type = #tpu.core_type<tc>, window_params = [{transform_indices = @transform_0, window_bounds = array<i64: 8, 16>}, {pipeline_mode = #tpu.pipeline_mode<synchronous>, transform_indices = @transform_1, window_bounds = array<i64: 544, 128>}, {transform_indices = @transform_2, window_bounds = array<i64: 8, 8>}]} {
    %c528 = arith.constant 528 : index
    %c0 = arith.constant 0 : index
    %0 = vector.load %arg2[%c528, %c0] : memref<544x128xbf16, #tpu.memory_space<vmem>>, vector<16x128xbf16>
    %1 = arith.extf %0 : vector<16x128xbf16> to vector<16x128xf32>
    %c0_0 = arith.constant 0 : index
    %c0_1 = arith.constant 0 : index
    %2 = vector.load %arg1[%c0_0, %c0_1] : memref<8x16xf32, #tpu.memory_space<vmem>>, vector<8x16xf32>
    %3 = arith.truncf %2 : vector<8x16xf32> to vector<8x16xbf16>
    %c0_2 = arith.constant 0 : index
    %c0_3 = arith.constant 0 : index
    %4 = vector.load %arg2[%c0_2, %c0_3] : memref<544x128xbf16, #tpu.memory_space<vmem>>, vector<16x128xbf16>
    %cst = arith.constant dense<0.000000e+00> : vector<8x128xf32>
    %5 = tpu.matmul %3, %4, %cst {dimension_numbers = #tpu.dot_dimension_numbers<[1], [0], [0], [1], [0, 0, 1, 1], [], []>} : vector<8x16xbf16>, vector<16x128xbf16>, vector<8x128xf32> -> vector<8x128xf32>
    %6 = vector.extract_strided_slice %1 {offsets = [0, 0], sizes = [1, 128], strides = [1, 1]} : vector<16x128xf32> to vector<1x128xf32>
    %7 = vector.broadcast %6 : vector<1x128xf32> to vector<8x128xf32>
    %8 = arith.addf %5, %7 : vector<8x128xf32>
    %cst_4 = arith.constant 2.000000e-01 : f32
    %9 = vector.broadcast %cst_4 : f32 to vector<8x128xf32>
    %10 = arith.mulf %9, %8 : vector<8x128xf32>
    %11 = arith.maximumf %8, %10 : vector<8x128xf32>
    %12 = arith.truncf %11 : vector<8x128xf32> to vector<8x128xbf16>
    %c16 = arith.constant 16 : index
    %c0_5 = arith.constant 0 : index
    %13 = vector.load %arg2[%c16, %c0_5] : memref<544x128xbf16, #tpu.memory_space<vmem>>, vector<128x128xbf16>
    %cst_6 = arith.constant dense<0.000000e+00> : vector<8x128xf32>
    %14 = tpu.matmul %12, %13, %cst_6 {dimension_numbers = #tpu.dot_dimension_numbers<[1], [0], [0], [1], [0, 0, 1, 1], [], []>} : vector<8x128xbf16>, vector<128x128xbf16>, vector<8x128xf32> -> vector<8x128xf32>
    %15 = vector.extract_strided_slice %1 {offsets = [1, 0], sizes = [1, 128], strides = [1, 1]} : vector<16x128xf32> to vector<1x128xf32>
    %16 = vector.broadcast %15 : vector<1x128xf32> to vector<8x128xf32>
    %17 = arith.addf %14, %16 : vector<8x128xf32>
    %cst_7 = arith.constant 2.000000e-01 : f32
    %18 = vector.broadcast %cst_7 : f32 to vector<8x128xf32>
    %19 = arith.mulf %18, %17 : vector<8x128xf32>
    %20 = arith.maximumf %17, %19 : vector<8x128xf32>
    %21 = arith.truncf %20 : vector<8x128xf32> to vector<8x128xbf16>
    %c144 = arith.constant 144 : index
    %c0_8 = arith.constant 0 : index
    %22 = vector.load %arg2[%c144, %c0_8] : memref<544x128xbf16, #tpu.memory_space<vmem>>, vector<128x128xbf16>
    %cst_9 = arith.constant dense<0.000000e+00> : vector<8x128xf32>
    %23 = tpu.matmul %21, %22, %cst_9 {dimension_numbers = #tpu.dot_dimension_numbers<[1], [0], [0], [1], [0, 0, 1, 1], [], []>} : vector<8x128xbf16>, vector<128x128xbf16>, vector<8x128xf32> -> vector<8x128xf32>
    %24 = vector.extract_strided_slice %1 {offsets = [2, 0], sizes = [1, 128], strides = [1, 1]} : vector<16x128xf32> to vector<1x128xf32>
    %25 = vector.broadcast %24 : vector<1x128xf32> to vector<8x128xf32>
    %26 = arith.addf %23, %25 : vector<8x128xf32>
    %cst_10 = arith.constant 2.000000e-01 : f32
    %27 = vector.broadcast %cst_10 : f32 to vector<8x128xf32>
    %28 = arith.mulf %27, %26 : vector<8x128xf32>
    %29 = arith.maximumf %26, %28 : vector<8x128xf32>
    %30 = arith.truncf %29 : vector<8x128xf32> to vector<8x128xbf16>
    %c272 = arith.constant 272 : index
    %c0_11 = arith.constant 0 : index
    %31 = vector.load %arg2[%c272, %c0_11] : memref<544x128xbf16, #tpu.memory_space<vmem>>, vector<128x128xbf16>
    %cst_12 = arith.constant dense<0.000000e+00> : vector<8x128xf32>
    %32 = tpu.matmul %30, %31, %cst_12 {dimension_numbers = #tpu.dot_dimension_numbers<[1], [0], [0], [1], [0, 0, 1, 1], [], []>} : vector<8x128xbf16>, vector<128x128xbf16>, vector<8x128xf32> -> vector<8x128xf32>
    %33 = vector.extract_strided_slice %1 {offsets = [3, 0], sizes = [1, 128], strides = [1, 1]} : vector<16x128xf32> to vector<1x128xf32>
    %34 = vector.broadcast %33 : vector<1x128xf32> to vector<8x128xf32>
    %35 = arith.addf %32, %34 : vector<8x128xf32>
    %cst_13 = arith.constant 2.000000e-01 : f32
    %36 = vector.broadcast %cst_13 : f32 to vector<8x128xf32>
    %37 = arith.mulf %36, %35 : vector<8x128xf32>
    %38 = arith.maximumf %35, %37 : vector<8x128xf32>
    %39 = arith.truncf %38 : vector<8x128xf32> to vector<8x128xbf16>
    %c400 = arith.constant 400 : index
    %c0_14 = arith.constant 0 : index
    %40 = vector.load %arg2[%c400, %c0_14] : memref<544x128xbf16, #tpu.memory_space<vmem>>, vector<128x128xbf16>
    %cst_15 = arith.constant dense<0.000000e+00> : vector<8x128xf32>
    %41 = tpu.matmul %39, %40, %cst_15 {dimension_numbers = #tpu.dot_dimension_numbers<[1], [0], [0], [1], [0, 0, 1, 1], [], []>} : vector<8x128xbf16>, vector<128x128xbf16>, vector<8x128xf32> -> vector<8x128xf32>
    %42 = vector.extract_strided_slice %1 {offsets = [4, 0], sizes = [1, 128], strides = [1, 1]} : vector<16x128xf32> to vector<1x128xf32>
    %43 = vector.broadcast %42 : vector<1x128xf32> to vector<8x128xf32>
    %44 = arith.addf %41, %43 : vector<8x128xf32>
    %45 = vector.extract_strided_slice %44 {offsets = [0, 0], sizes = [8, 8], strides = [1, 1]} : vector<8x128xf32> to vector<8x8xf32>
    %c0_16 = arith.constant 0 : index
    %c0_17 = arith.constant 0 : index
    %46 = vector.load %arg3[%c0_16, %c0_17] : memref<8x8xf32, #tpu.memory_space<vmem>>, vector<8x8xf32>
    tpu.vector_store %arg3[%c0_16, %c0_17], %45 {strides = array<i32>} : memref<8x8xf32, #tpu.memory_space<vmem>>, vector<8x8xf32>,
    return
  }
  func.func @transform_0(%arg0: i32) -> (i32, i32) {
    %c0_i32 = arith.constant 0 : i32
    %c0_i32_0 = arith.constant 0 : i32
    return %arg0, %c0_i32 : i32, i32
  }
  func.func @transform_1(%arg0: i32) -> (i32, i32) {
    %c0_i32 = arith.constant 0 : i32
    %c0_i32_0 = arith.constant 0 : i32
    %c0_i32_1 = arith.constant 0 : i32
    return %c0_i32, %c0_i32_0 : i32, i32
  }
  func.func @transform_2(%arg0: i32) -> (i32, i32) {
    %c0_i32 = arith.constant 0 : i32
    %c0_i32_0 = arith.constant 0 : i32
    return %arg0, %c0_i32 : i32, i32
  }
}

</mosaic_0001>

<bundles_post_ra>
// kernel: forward.1
= control target key start
LH: loop header
LB: loop body
LE: loop exit
PB: predicated region body
PF: predicated region fallthrough
CT: control target
= control target key end

     0   :  { %7 = vsyncpa [#allocation3], 0  ;;  %s953_s0 = inlined_call_operand.hbm [shape: f32[8,16], index: 0, kind: input, shape index: {}]   ;;  %s954_s1 = inlined_call_operand.hbm [shape: bf16[544,128], index: 1, kind: input, shape index: {}]   ;;  %s955_s2 = inlined_call_operand.hbm [shape: f32[8,8], index: 2, kind: output, shape index: {}]  }
   0x1   :  { %8 = vsyncpa [#allocation6], 0 }
   0x2   :  { %9 = vsyncpa [#allocation4], 0  ;;  %s831_s9 = smov [#allocation2]   ;;  %s832_s11 = smov [#allocation5]  }
   0x3   :  { %s16_s10 = sshll.u32 %s831_s9, 4  ;;  %s25_s12 = sshll.u32 %s832_s11, 4  ;;  %s17_s10 = int_to_ptr.vmem [resolvable:$true] %s16_s10  ;;  %s853_s12 = int_to_ptr.vmem [resolvable:$true] %s25_s12 }
   0x4   :  { %s759_s15 = scalar_lea.hbm %s953_s0, 128 }
   0x5   :  { %p760_p0 = scmp.ne.s32.totalorder %s953_s0, %s759_s15  ;;  %p763_p1 = scmp.lt.u32.totalorder %s759_s15, %s953_s0 }
   0x7   :  { %p765_p2 = pnand %p763_p1, %p760_p0 }
   0x9   :  { %768 = shalt.err (!%p765_p2)
}
   0xa   :  { %s769_s20 = scalar_lea.vmem %s17_s10, 128  ;;  %p774_p4 = scmp.lt.s32.totalorder %s17_s10, %s17_s10 }
   0xb   :  { %p770_p3 = scmp.ne.s32.totalorder %s17_s10, %s769_s20  ;;  %p775_p5 = scmp.lt.s32.totalorder %s769_s20, %s769_s20 }
   0xd   :  { %p776_p6 = por %p775_p5, %p774_p4 }
   0xf   :  { %p777_p7 = pnand %p776_p6, %p770_p3 }
  0x11   :  { %780 = shalt.err (!%p777_p7)
}
  0x12   :  { %19 = dma.hbm_to_vmem [thread:$0]  %s953_s0, 128, %s17_s10, [#allocation3]  }
  0x13   :  { %s781_s25 = scalar_lea.hbm %s954_s1, 4352 }
  0x14   :  { %p782_p8 = scmp.ne.s32.totalorder %s954_s1, %s781_s25  ;;  %p785_p9 = scmp.lt.u32.totalorder %s781_s25, %s954_s1 }
  0x16   :  { %p787_p10 = pnand %p785_p9, %p782_p8 }
  0x18   :  { %790 = shalt.err (!%p787_p10)
}
  0x19   :  { %s791_s30 = scalar_lea.vmem %s853_s12, 4352  ;;  %p796_p12 = scmp.lt.s32.totalorder %s853_s12, %s853_s12 }
  0x1a   :  { %p792_p11 = scmp.ne.s32.totalorder %s853_s12, %s791_s30  ;;  %p797_p13 = scmp.lt.s32.totalorder %s791_s30, %s791_s30 }
  0x1c   :  { %p798_p0 = por %p797_p13, %p796_p12 }
  0x1e   :  { %p799_p1 = pnand %p798_p0, %p792_p11 }
  0x20   :  { %802 = shalt.err (!%p799_p1)
}
  0x21   :  { %s833_s0 = smov 64   ;;  %s834_s3 = smov 4  }
  0x22   :  { %31 = dma.hbm_to_vmem [thread:$0]  %s954_s1, 4352, %s853_s12, [#allocation6], %s833_s0, %s833_s0, %s834_s3  }
  0x23   :  { %825 = dma.done.wait [#allocation3], 128  }
  0x24   :  { %826 = vsyncadd [#allocation3], 4294967168 }
  0x25   :  { %827 = dma.done.wait [#allocation6], 4352  }
  0x26   :  { %828 = vsyncadd [#allocation6], 4294962944  ;;  %v835_v0 = vmov 0.0   ;;  %vm836_vm0 = vmmov 0   ;;  %v726_v1 = vld [vmem:[#allocation5] sm:$0xff]   ;;  %v41_v2 = vld [vmem:[#allocation2] sm:$0xff]  ;;  %v45_v18 = vlaneseq }
  0x27   :  { %633 = vmatprep.subr.bf16.mxu0 %v835_v0  ;;  %635 = vmatprep.mubr.msk.bf16.mxu0 %vm836_vm0, %v835_v0  ;;  %v42_v3 = vpack.c.bf16 %v41_v2, %v41_v2  ;;  %vm55_vm1 = vcmask 130048   ;;  %v727_v4 = vld [vmem:[#allocation5 + $0x8] sm:$0xff]   ;;  %v728_v5 = vld [vmem:[#allocation5 + $0x10] sm:$0xff]   ;;  %v729_v6 = vld [vmem:[#allocation5 + $0x18] sm:$0xff]   ;;  %s837_s1 = smov [#allocation7]   ;;  %vm543_vm2 = vcmask 64512  }
  0x28   :  { %639 = vmatprep.subr.bf16.mxu1 %v835_v0  ;;  %655 = vmatprep.mubr.msk.bf16.mxu1 %vm836_vm0, %v835_v0  ;;  %v730_v7 = vld [vmem:[#allocation5 + $0x20] sm:$0xff]   ;;  %v731_v8 = vld [vmem:[#allocation5 + $0x28] sm:$0xff]   ;;  %v732_v9 = vld [vmem:[#allocation5 + $0x30] sm:$0xff]   ;;  %v907_v19 = vshrl.u32 %v45_v18, 7  ;;  %s551_s6 = sshll.u32 %s837_s1, 4  ;;  %s552_s6 = int_to_ptr.vmem [resolvable:$true] %s551_s6 }
  0x29   :  { %634 = vmatpush3.bf16.msra.mxu0 %v726_v1  ;;  %640 = vmatpush3.bf16.msra.mxu1 %v727_v4  ;;  %v733_v10 = vld [vmem:[#allocation5 + $0x38] sm:$0xff]   ;;  %v734_v11 = vld [vmem:[#allocation5 + $0x40] sm:$0xff]   ;;  %v735_v12 = vld [vmem:[#allocation5 + $0x48] sm:$0xff]   ;;  %s803_s7 = scalar_lea.vmem %s552_s6, 128  ;;  %p808_p3 = scmp.lt.s32.totalorder %s552_s6, %s552_s6 }
  0x2a   :  { %659 = vmatprep.subr.bf16.mxu0 %v835_v0  ;;  %641 = vmatprep.subr.bf16.mxu1 %v835_v0  ;;  %v736_v13 = vld [vmem:[#allocation5 + $0x50] sm:$0xff]   ;;  %v737_v14 = vld [vmem:[#allocation5 + $0x58] sm:$0xff]   ;;  %v738_v15 = vld [vmem:[#allocation5 + $0x60] sm:$0xff]   ;;  %v47_v22 = vsub.s32 0, %v907_v19  ;;  %v120_v40 = vsub.s32 1, %v907_v19  ;;  %v231_v58 = vsub.s32 2, %v907_v19  ;;  %p804_p2 = scmp.ne.s32.totalorder %s552_s6, %s803_s7  ;;  %p809_p4 = scmp.lt.s32.totalorder %s803_s7, %s803_s7 }
  0x2b   :  { %v739_v16 = vld [vmem:[#allocation5 + $0x68] sm:$0xff]   ;;  %v740_v17 = vld [vmem:[#allocation5 + $0x70] sm:$0xff]   ;;  %v741_v32 = vld [vmem:[#allocation5 + $0x78] sm:$0xff]  }
  0x2c   :  { %636 = vmatmul.mubr.msk.bf16.vlgmr.msra.gmra.mrb[0].mxu0 %vm55_vm1, %v42_v3  ;;  %v39_v20 = vld [vmem:[#allocation5 + $0x108] sm:$0xf]  ;;  %v742_v33 = vld [vmem:[#allocation5 + $0x80] sm:$0xff]   ;;  %v744_v35 = vld [vmem:[#allocation5 + $0x90] sm:$0xff]   ;;  %p810_p5 = por %p809_p4, %p808_p3 }
  0x2d   :  { %675 = vmatprep.mubr.msk.bf16.mxu0 %vm836_vm0, %v835_v0  ;;  %642 = vmatpush3.bf16.msra.mxu1 %v728_v5  ;;  %v909_v21 = vunpack.c.l.bf16 %v39_v20  ;;  %v743_v34 = vld [vmem:[#allocation5 + $0x88] sm:$0xff]   ;;  %v745_v36 = vld [vmem:[#allocation5 + $0x98] sm:$0xff]   ;;  %v746_v37 = vld [vmem:[#allocation5 + $0xa0] sm:$0xff]  }
  0x2e   :  { %643 = vmatprep.subr.bf16.mxu1 %v835_v0  ;;  %660 = vmatpush3.bf16.msra.mxu0 %v735_v12  ;;  %v747_v38 = vld [vmem:[#allocation5 + $0xa8] sm:$0xff]   ;;  %v748_v39 = vld [vmem:[#allocation5 + $0xb0] sm:$0xff]   ;;  %v749_v50 = vld [vmem:[#allocation5 + $0xb8] sm:$0xff]   ;;  %p811_p6 = pnand %p810_p5, %p804_p2 }
  0x2f   :  { %661 = vmatprep.subr.bf16.mxu0 %v835_v0  ;;  %v48_v23 = vrot.slane %v909_v21, %v47_v22  ;;  %v121_v41 = vrot.slane %v909_v21, %v120_v40  ;;  %v750_v51 = vld [vmem:[#allocation5 + $0xc0] sm:$0xff]   ;;  %v751_v52 = vld [vmem:[#allocation5 + $0xc8] sm:$0xff]   ;;  %v752_v53 = vld [vmem:[#allocation5 + $0xd0] sm:$0xff]   ;;  %v232_v59 = vrot.slane %v909_v21, %v231_v58 }
  0x30   :  { %v753_v54 = vld [vmem:[#allocation5 + $0xd8] sm:$0xff]   ;;  %v754_v55 = vld [vmem:[#allocation5 + $0xe0] sm:$0xff]   ;;  %v755_v56 = vld [vmem:[#allocation5 + $0xe8] sm:$0xff]  }
  0x31   :  { %644 = vmatpush3.bf16.msra.mxu1 %v729_v6  ;;  %v756_v57 = vld [vmem:[#allocation5 + $0xf0] sm:$0xff]   ;;  %v757_v5 = vld [vmem:[#allocation5 + $0xf8] sm:$0xff]   ;;  %v758_v6 = vld [vmem:[#allocation5 + $0x100] sm:$0xff]  }
  0x32   :  { %645 = vmatprep.subr.bf16.mxu1 %v835_v0  ;;  %662 = vmatpush3.bf16.msra.mxu0 %v736_v13 }
  0x33   :  { %663 = vmatprep.subr.bf16.mxu0 %v835_v0 }
  0x35   :  { %646 = vmatpush3.bf16.msra.mxu1 %v730_v7  ;;  %v342_v7 = vsub.s32 3, %v907_v19 }
  0x36   :  { %647 = vmatprep.subr.bf16.mxu1 %v835_v0  ;;  %664 = vmatpush3.bf16.msra.mxu0 %v737_v14 }
  0x37   :  { %665 = vmatprep.subr.bf16.mxu0 %v835_v0 }
  0x39   :  { %648 = vmatpush3.bf16.msra.mxu1 %v731_v8  ;;  %v343_v8 = vrot.slane %v909_v21, %v342_v7 }
  0x3a   :  { %649 = vmatprep.subr.bf16.mxu1 %v835_v0  ;;  %666 = vmatpush3.bf16.msra.mxu0 %v738_v15 }
  0x3b   :  { %667 = vmatprep.subr.bf16.mxu0 %v835_v0 }
  0x3d   :  { %650 = vmatpush3.bf16.msra.mxu1 %v732_v9 }
  0x3e   :  { %651 = vmatprep.subr.bf16.mxu1 %v835_v0  ;;  %668 = vmatpush3.bf16.msra.mxu0 %v739_v16 }
  0x3f   :  { %669 = vmatprep.subr.bf16.mxu0 %v835_v0 }
  0x41   :  { %652 = vmatpush3.bf16.msra.mxu1 %v733_v10 }
  0x42   :  { %653 = vmatprep.subr.bf16.mxu1 %v835_v0  ;;  %670 = vmatpush3.bf16.msra.mxu0 %v740_v17  ;;  %v453_v17 = vsub.s32 4, %v907_v19 }
  0x43   :  { %671 = vmatprep.subr.bf16.mxu0 %v835_v0 }
  0x44   :  { %v454_v18 = vrot.slane %v909_v21, %v453_v17 }
  0x45   :  { %654 = vmatpush3.bf16.msra.mxu1 %v734_v11 }
  0x46   :  { %679 = vmatprep.subr.bf16.mxu1 %v835_v0  ;;  %672 = vmatpush3.bf16.msra.mxu0 %v741_v32 }
  0x47   :  { %673 = vmatprep.subr.bf16.mxu0 %v835_v0 }
  0x4a   :  { %674 = vmatpush3.bf16.msra.mxu0 %v742_v33 }
  0x4b   :  { %699 = vmatprep.subr.bf16.mxu0 %v835_v0 }
  0xff   :  { %v93_v24 = vpop.f32.mrb[0].mxu0 }
 0x100   :  { %v94_v25 = vadd.f32 %v93_v24, %v48_v23  ;;  %v637_v26 = vpop.f32.mrb[1].mxu0 }
 0x101   :  { %v96_v27 = vpop.f32.mrb[2].mxu0 }
 0x102   :  { %v99_v28 = vmul.f32 0.2, %v94_v25  ;;  %v638_v29 = vpop.f32.mrb[3].mxu0 }
 0x104   :  { %v100_v30 = vmax.f32 %v94_v25, %v99_v28 }
 0x106   :  { %v101_v31 = vpack.c.bf16 %v100_v30, %v100_v30 }
 0x108   :  { %656 = vmatmul.mubr.bf16.vlgmr.msra.gmra.mrb[0].mxu1 %v101_v31 }
 0x109   :  { %695 = vmatprep.mubr.msk.bf16.mxu1 %vm836_vm0, %v835_v0  ;;  %680 = vmatpush3.bf16.msra.mxu1 %v743_v34 }
 0x10a   :  { %681 = vmatprep.subr.bf16.mxu1 %v835_v0 }
 0x10d   :  { %682 = vmatpush3.bf16.msra.mxu1 %v744_v35 }
 0x10e   :  { %683 = vmatprep.subr.bf16.mxu1 %v835_v0 }
 0x111   :  { %684 = vmatpush3.bf16.msra.mxu1 %v745_v36 }
 0x112   :  { %685 = vmatprep.subr.bf16.mxu1 %v835_v0 }
 0x115   :  { %686 = vmatpush3.bf16.msra.mxu1 %v746_v37 }
 0x116   :  { %687 = vmatprep.subr.bf16.mxu1 %v835_v0 }
 0x119   :  { %688 = vmatpush3.bf16.msra.mxu1 %v747_v38 }
 0x11a   :  { %689 = vmatprep.subr.bf16.mxu1 %v835_v0 }
 0x11d   :  { %690 = vmatpush3.bf16.msra.mxu1 %v748_v39 }
 0x11e   :  { %691 = vmatprep.subr.bf16.mxu1 %v835_v0 }
 0x121   :  { %692 = vmatpush3.bf16.msra.mxu1 %v749_v50 }
 0x122   :  { %693 = vmatprep.subr.bf16.mxu1 %v835_v0 }
 0x125   :  { %694 = vmatpush3.bf16.msra.mxu1 %v750_v51 }
 0x1db   :  { %v204_v42 = vpop.f32.mrb[0].mxu1 }
 0x1dc   :  { %v205_v43 = vadd.f32 %v204_v42, %v121_v41  ;;  %v657_v44 = vpop.f32.mrb[1].mxu1 }
 0x1dd   :  { %v207_v45 = vpop.f32.mrb[2].mxu1 }
 0x1de   :  { %v210_v46 = vmul.f32 0.2, %v205_v43  ;;  %v658_v47 = vpop.f32.mrb[3].mxu1 }
 0x1e0   :  { %v211_v48 = vmax.f32 %v205_v43, %v210_v46 }
 0x1e2   :  { %v212_v49 = vpack.c.bf16 %v211_v48, %v211_v48 }
 0x1e4   :  { %676 = vmatmul.mubr.bf16.vlgmr.msra.gmra.mrb[4].mxu0 %v212_v49 }
 0x1e5   :  { %715 = vmatprep.mubr.msk.bf16.mxu0 %vm836_vm0, %v835_v0  ;;  %700 = vmatpush3.bf16.msra.mxu0 %v751_v52 }
 0x1e6   :  { %701 = vmatprep.subr.bf16.mxu0 %v835_v0 }
 0x1e9   :  { %702 = vmatpush3.bf16.msra.mxu0 %v752_v53 }
 0x1ea   :  { %703 = vmatprep.subr.bf16.mxu0 %v835_v0 }
 0x1ed   :  { %704 = vmatpush3.bf16.msra.mxu0 %v753_v54 }
 0x1ee   :  { %705 = vmatprep.subr.bf16.mxu0 %v835_v0 }
 0x1f1   :  { %706 = vmatpush3.bf16.msra.mxu0 %v754_v55 }
 0x1f2   :  { %707 = vmatprep.subr.bf16.mxu0 %v835_v0 }
 0x1f5   :  { %708 = vmatpush3.bf16.msra.mxu0 %v755_v56 }
 0x1f6   :  { %709 = vmatprep.subr.bf16.mxu0 %v835_v0 }
 0x1f9   :  { %710 = vmatpush3.bf16.msra.mxu0 %v756_v57 }
 0x1fa   :  { %711 = vmatprep.subr.bf16.mxu0 %v835_v0 }
 0x1fd   :  { %712 = vmatpush3.bf16.msra.mxu0 %v757_v5 }
 0x1fe   :  { %713 = vmatprep.subr.bf16.mxu0 %v835_v0 }
 0x201   :  { %714 = vmatpush3.bf16.msra.mxu0 %v758_v6 }
 0x2b7   :  { %v315_v60 = vpop.f32.mrb[4].mxu0 }
 0x2b8   :  { %v316_v61 = vadd.f32 %v315_v60, %v232_v59  ;;  %v677_v62 = vpop.f32.mrb[5].mxu0 }
 0x2b9   :  { %v318_v63 = vpop.f32.mrb[6].mxu0 }
 0x2ba   :  { %v321_v1 = vmul.f32 0.2, %v316_v61  ;;  %v678_v2 = vpop.f32.mrb[7].mxu0 }
 0x2bc   :  { %v322_v3 = vmax.f32 %v316_v61, %v321_v1 }
 0x2be   :  { %v323_v4 = vpack.c.bf16 %v322_v3, %v322_v3 }
 0x2c0   :  { %696 = vmatmul.mubr.bf16.vlgmr.msra.gmra.mrb[4].mxu1 %v323_v4 }
 0x393   :  { %v426_v9 = vpop.f32.mrb[4].mxu1 }
 0x394   :  { %v427_v10 = vadd.f32 %v426_v9, %v343_v8  ;;  %v697_v11 = vpop.f32.mrb[5].mxu1 }
 0x395   :  { %v429_v12 = vpop.f32.mrb[6].mxu1 }
 0x396   :  { %v432_v13 = vmul.f32 0.2, %v427_v10  ;;  %v698_v14 = vpop.f32.mrb[7].mxu1 }
 0x398   :  { %v433_v15 = vmax.f32 %v427_v10, %v432_v13 }
 0x39a   :  { %v434_v16 = vpack.c.bf16 %v433_v15, %v433_v15 }
 0x39c   :  { %716 = vmatmul.mubr.bf16.vlgmr.msra.gmra.mrb[8].mxu0 %v434_v16 }
 0x46f   :  { %v537_v0 = vpop.f32.mrb[8].mxu0 }
 0x470   :  { %v538_v20 = vadd.f32 %v537_v0, %v454_v18  ;;  %v717_v22 = vpop.f32.mrb[9].mxu0 }
 0x471   :  { %v540_v23 = vpop.f32.mrb[10].mxu0 }
 0x472   :  { %v718_v24 = vpop.f32.mrb[11].mxu0  ;;  %544 = vst.msk [vmem:[#allocation7] sm:$0xff] %vm543_vm2, %v538_v20 }
 0x473   :  { %814 = shalt.err (!%p811_p6)
}
 0x474   :  { %s815_s10 = scalar_lea.hbm %s955_s2, 128 }
 0x475   :  { %p816_p7 = scmp.ne.s32.totalorder %s955_s2, %s815_s10  ;;  %p819_p8 = scmp.lt.u32.totalorder %s815_s10, %s955_s2 }
 0x477   :  { %p821_p9 = pnand %p819_p8, %p816_p7 }
 0x479   :  { %824 = shalt.err (!%p821_p9)
}
 0x47a   :  { %554 = dma.vmem_to_hbm [thread:$0]  %s552_s6, 128, %s955_s2, [#allocation4]  }
 0x47b   :  { %829 = dma.done.wait [#allocation4], 128  }
 0x47c   :  { %830 = vsyncadd [#allocation4], 4294967168 }
 0x47d   :  { %558 = vsyncpa [#allocation3], 1 }
 0x47e   :  { %559 = vsyncpa [#allocation6], 1 }
 0x47f   :  { %560 = vsyncpa [#allocation4], 1 }

</bundles_post_ra>
